<compile_context>
chip_gen: v5e
topology: v5e:2x2
jax: 0.10.0
libtpu: 0.0.40
codegen_flags: <defaults>
</compile_context>

<pallas_src>
import jax
import jax.numpy as jnp
from jax import lax
from jax.experimental import pallas as pl
from jax.experimental.pallas import tpu as pltpu


def _vmem_budget():
    """Chip-aware VMEM budget.  v5e/v6e: 128 MiB physical, v7x: 64 MiB per core;
    scoped defaults (16/32 MiB) are raised explicitly so large-T shapes still get
    roofline-sized blocks."""
    try:
        cap = int(pltpu.get_tpu_info().vmem_capacity_bytes)
    except Exception:
        cap = 64 << 20                                   # conservative fallback (v7x)
    vmem_limit = min(int(cap * 0.75), 100 << 20)
    block_budget = max(vmem_limit - (4 << 20), 8 << 20)  # headroom for Mosaic scratch
    return vmem_limit, block_budget


def _step_bytes(b_tile, f_tile, T, C, x_bytes, out_bytes):
    # Pallas double-buffers every input/output block; W is grid-invariant but
    # budget two copies of it anyway.
    return (2 * b_tile * f_tile * T * x_bytes
            + 2 * b_tile * C * f_tile * out_bytes
            + 2 * C * T * 4)


def _choose_tiles(B, F, T, C, x_bytes, out_bytes, block_budget):
    """Pick (b_tile, f_tile).

    f_tile: largest multiple of 128 dividing F that fits the VMEM budget
    (lane-dense, unmasked stores); the full axis when F is not lane-aligned.
    b_tile: grown over divisors of B until each grid step streams >= ~1 MiB of x,
    amortizing per-grid-step pipeline overhead when per-batch F*T is small.
    """
    if F % 128 == 0:
        f_tile = 128
        for cand in range(F, 127, -128):
            if F % cand == 0 and _step_bytes(1, cand, T, C, x_bytes, out_bytes) <= block_budget:
                f_tile = cand
                break
    else:
        f_tile = F

    b_tile = 1
    target = 1 << 20                                     # >= ~1 MiB of x per step
    if f_tile * T * x_bytes < target:
        for d in range(2, min(B, 8) + 1):
            if B % d != 0:
                continue
            if _step_bytes(d, f_tile, T, C, x_bytes, out_bytes) > block_budget:
                break
            b_tile = d
            if d * f_tile * T * x_bytes >= target:
                break

    # v7x megacore: if everything collapsed to a single grid step, split once so
    # both TensorCores get work (both grid axes are "parallel").
    if (B // b_tile) * (F // f_tile) < 2:
        if b_tile > 1:
            half = b_tile // 2
            b_tile = half if B % half == 0 else 1
        elif (F % 128 == 0 and f_tile >= 256
              and (f_tile // 2) % 128 == 0 and F % (f_tile // 2) == 0):
            f_tile //= 2
    return b_tile, f_tile


def csa_kernel(w_ref, x_ref, out_ref):
    # w_ref:   (C, T)                combined weights, VMEM-resident across the grid
    # x_ref:   (b_tile, f_tile, T)   one (batch, feature) slab of the input
    # out_ref: (b_tile, C, f_tile)   matching output block, lane-dense along F
    for b in range(x_ref.shape[0]):                      # tiny static unroll (b_tile <= 8)
        out = lax.dot_general(
            w_ref[...], x_ref[b],
            dimension_numbers=(((1,), (1,)), ((), ())),  # contract T vs T ("nt" form)
            preferred_element_type=jnp.float32,          # f32 accumulation on the MXU
        )                                                # (C, f_tile)
        out_ref[b] = out.astype(out_ref.dtype)


def csa_forward(inputs, store_attn, csa_sigma, num_classes, iter_epoch, csa_training):
    """Mirrors CSAModule.forward.  inputs: (B, num_f, num_t) -> (B, num_classes, num_f)."""
    # The PyTorch module also branches eagerly on these; coerce so a traced value
    # fails loudly instead of silently mis-branching.
    iter_epoch = int(iter_epoch)
    csa_training = bool(csa_training)

    B, F, T = inputs.shape
    C = num_classes

    if csa_training:
        # TODO(synk): updata_storeQuery (stateful training-time store_attn update via the
        # key/query 1x1 convs and per-class index lists) not implemented; class_id_list is
        # None in the reference module, so this path is undefined without external state.
        raise NotImplementedError("csa_training=True path not implemented")

    if iter_epoch == 0:
        # Trivial branch: mean over time, repeated per class (pure glue, no kernel needed).
        x_mean = jnp.mean(inputs, axis=-1, keepdims=True)                 # (B, F, 1)
        return jnp.transpose(jnp.tile(x_mean, (1, 1, C)), (0, 2, 1))      # (B, C, F)

    # Tiny (C, T) precompute: fold the per-class column mean, the time mean of x and
    # csa_sigma into one weight matrix (O(C*T*T), negligible next to the O(B*F*T*C)
    # streaming contraction the kernel performs; cuts attention HBM traffic by T).
    attn_mean = jnp.mean(store_attn.astype(jnp.float32), axis=-1)         # (C, T)
    w = csa_sigma[0].astype(jnp.float32) * attn_mean + jnp.float32(1.0 / T)

    # Stream x in its native dtype (bf16 halves HBM cost; the kernel is read-bound).
    if inputs.dtype in (jnp.bfloat16, jnp.float32):
        x_in = inputs
    else:
        x_in = inputs.astype(jnp.float32)
    # NOTE: on the bf16 path W is quantized to bf16 to match the MXU operand dtype;
    # accumulation stays f32, expect bf16-level tolerance vs an f32 reference.
    w = w.astype(x_in.dtype)

    out_dtype = x_in.dtype
    x_bytes = jnp.dtype(x_in.dtype).itemsize
    out_bytes = jnp.dtype(out_dtype).itemsize

    vmem_limit, block_budget = _vmem_budget()
    b_tile, f_tile = _choose_tiles(B, F, T, C, x_bytes, out_bytes, block_budget)
    grid = (B // b_tile, F // f_tile)

    cost = pl.CostEstimate(
        flops=2 * B * C * F * T,
        transcendentals=0,
        bytes_accessed=B * F * T * x_bytes + B * C * F * out_bytes + C * T * x_bytes,
    )

    out = pl.pallas_call(
        csa_kernel,
        out_shape=jax.ShapeDtypeStruct((B, C, F), out_dtype),
        grid_spec=pltpu.PrefetchScalarGridSpec(
            num_scalar_prefetch=0,
            grid=grid,
            in_specs=[
                # W stays resident across the whole grid (same block every step).
                pl.BlockSpec((C, T), lambda b, f: (0, 0)),
                # One (b_tile, f_tile, T) slab of x per step, double-buffered by Pallas.
                pl.BlockSpec((b_tile, f_tile, T), lambda b, f: (b, f, 0)),
            ],
            out_specs=pl.BlockSpec((b_tile, C, f_tile), lambda b, f: (b, 0, f)),
        ),
        compiler_params=pltpu.CompilerParams(
            dimension_semantics=("parallel", "parallel"),
            vmem_limit_bytes=vmem_limit,
        ),
        cost_estimate=cost,
    )(w, x_in)
    return out                                                            # (B, C, F)


def csa_forward_ref(inputs, store_attn, sigma, num_classes):
    """Pure-JAX reference reproducing the PyTorch forward (non-trivial branch)."""
    outs = []
    for i in range(num_classes):
        class_out = jnp.mean(
            jnp.matmul(inputs, store_attn[i], precision=lax.Precision.HIGHEST),
            axis=-1, keepdims=True)
        outs.append(class_out)
    outputs = jnp.transpose(jnp.concatenate(outs, axis=2), (0, 2, 1))
    inp = jnp.transpose(
        jnp.tile(jnp.mean(inputs, axis=-1, keepdims=True), (1, 1, num_classes)), (0, 2, 1))
    return inp + sigma * outputs


if __name__ == "__main__":
    # Small shapes consistent with the module: inputs are (B, num_f, num_t) (Conv1d NCW layout).
    num_classes, num_f, num_t = 4, 8, 16
    B = 2
    csa_dim = 128

    key = jax.random.PRNGKey(0)
    k_x, k_attn, k_kw, k_qw, k_x2, k_a2 = jax.random.split(key, 6)

    x = jax.random.normal(k_x, (B, num_f, num_t), jnp.float32)
    # store_attn is zeros in __init__ and softmax(-1)-normalized after training updates; a
    # softmax state degenerates mean(x @ A_c, -1) to mean(x, -1), so use a general random
    # state here so the per-class weighting is actually exercised by the check.
    store_attn = jax.random.normal(k_attn, (num_classes, num_t, num_t), jnp.float32)
    csa_sigma = jnp.ones((1,), jnp.float32)        # csa_sigma != 0 in __init__ -> ones(1)

    # Parameters present in __init__ but only used by the (skipped) training update path.
    key_conv1_w = jax.random.normal(k_kw, (csa_dim, num_f, 1), jnp.float32) * 0.02
    key_conv1_b = jnp.zeros((csa_dim,), jnp.float32)
    query_conv1_w = jax.random.normal(k_qw, (csa_dim, num_f, 1), jnp.float32) * 0.02
    query_conv1_b = jnp.zeros((csa_dim,), jnp.float32)

    # Main (inference) path through the Pallas kernel.
    out = jax.block_until_ready(
        csa_forward(x, store_attn, csa_sigma, num_classes, iter_epoch=1, csa_training=False))
    assert out.shape == (B, num_classes, num_f), out.shape
    ref = csa_forward_ref(x, store_attn, csa_sigma[0], num_classes)
    assert jnp.allclose(out, ref, atol=1e-4, rtol=1e-4), float(jnp.max(jnp.abs(out - ref)))

    # Lane-aligned shape: exercises the multiple-of-128 f_tile path plus the
    # batch-tiling / megacore-split logic.
    C2, F2, T2, B2 = 4, 256, 128, 2
    x2 = jax.random.normal(k_x2, (B2, F2, T2), jnp.float32)
    a2 = jax.random.normal(k_a2, (C2, T2, T2), jnp.float32) * 0.1
    out2 = jax.block_until_ready(
        csa_forward(x2, a2, csa_sigma, C2, iter_epoch=1, csa_training=False))
    assert out2.shape == (B2, C2, F2), out2.shape
    ref2 = csa_forward_ref(x2, a2, csa_sigma[0], C2)
    assert jnp.allclose(out2, ref2, atol=1e-3, rtol=1e-3), float(jnp.max(jnp.abs(out2 - ref2)))

    # Trivial branch (iter_epoch == 0, csa_training == False).
    out0 = jax.block_until_ready(
        csa_forward(x, store_attn, csa_sigma, num_classes, iter_epoch=0, csa_training=False))
    assert out0.shape == (B, num_classes, num_f)
    ref0 = jnp.transpose(
        jnp.tile(jnp.mean(x, -1, keepdims=True), (1, 1, num_classes)), (0, 2, 1))
    assert jnp.allclose(out0, ref0, atol=1e-6)

    print("KERNEL_OK")
</pallas_src>

<mosaic_0001>
module attributes {stable_mosaic.version = 11 : i64} {
  func.func @csa_kernel(%arg0: i32, %arg1: i32, %arg2: memref<4x16xf32, #tpu.memory_space<vmem>>, %arg3: memref<1x8x16xf32, #tpu.memory_space<vmem>>, %arg4: memref<1x4x8xf32, #tpu.memory_space<vmem>>) attributes {dimension_semantics = [#tpu.dimension_semantics<parallel>, #tpu.dimension_semantics<parallel>], iteration_bounds = array<i64: 2, 1>, scalar_prefetch = 0 : i64, scratch_operands = 0 : i64, tpu.core_type = #tpu.core_type<tc>, window_params = [{pipeline_mode = #tpu.pipeline_mode<synchronous>, transform_indices = @transform_0, window_bounds = array<i64: 4, 16>}, {transform_indices = @transform_1, window_bounds = array<i64: 1, 8, 16>}, {transform_indices = @transform_2, window_bounds = array<i64: 1, 4, 8>}]} {
    %c0 = arith.constant 0 : index
    %c0_0 = arith.constant 0 : index
    %0 = vector.load %arg2[%c0, %c0_0] : memref<4x16xf32, #tpu.memory_space<vmem>>, vector<4x16xf32>
    %c0_1 = arith.constant 0 : index
    %c0_2 = arith.constant 0 : index
    %c0_3 = arith.constant 0 : index
    %1 = vector.load %arg3[%c0_1, %c0_2, %c0_3] : memref<1x8x16xf32, #tpu.memory_space<vmem>>, vector<1x8x16xf32>
    %2 = vector.shape_cast %1 : vector<1x8x16xf32> to vector<8x16xf32>
    %cst = arith.constant dense<0.000000e+00> : vector<4x8xf32>
    %3 = tpu.matmul %0, %2, %cst {dimension_numbers = #tpu.dot_dimension_numbers<[1], [1], [0], [0], [0, 0, 1, 0], [], []>} : vector<4x16xf32>, vector<8x16xf32>, vector<4x8xf32> -> vector<4x8xf32>
    %c0_4 = arith.constant 0 : index
    %c0_5 = arith.constant 0 : index
    %c0_6 = arith.constant 0 : index
    %4 = vector.load %arg4[%c0_4, %c0_5, %c0_6] : memref<1x4x8xf32, #tpu.memory_space<vmem>>, vector<1x4x8xf32>
    %5 = vector.shape_cast %4 : vector<1x4x8xf32> to vector<4x8xf32>
    %6 = vector.shape_cast %3 : vector<4x8xf32> to vector<1x4x8xf32>
    tpu.vector_store %arg4[%c0_4, %c0_5, %c0_6], %6 {strides = array<i32>} : memref<1x4x8xf32, #tpu.memory_space<vmem>>, vector<1x4x8xf32>,
    return
  }
  func.func @transform_0(%arg0: i32, %arg1: i32) -> (i32, i32) {
    %c0_i32 = arith.constant 0 : i32
    %c0_i32_0 = arith.constant 0 : i32
    %c0_i32_1 = arith.constant 0 : i32
    return %c0_i32, %c0_i32_0 : i32, i32
  }
  func.func @transform_1(%arg0: i32, %arg1: i32) -> (i32, i32, i32) {
    %c0_i32 = arith.constant 0 : i32
    %c0_i32_0 = arith.constant 0 : i32
    return %arg0, %arg1, %c0_i32 : i32, i32, i32
  }
  func.func @transform_2(%arg0: i32, %arg1: i32) -> (i32, i32, i32) {
    %c0_i32 = arith.constant 0 : i32
    %c0_i32_0 = arith.constant 0 : i32
    return %arg0, %c0_i32, %arg1 : i32, i32, i32
  }
}

</mosaic_0001>

<bundles_post_ra>
// kernel: tpu_custom_call.1
= control target key start
LH: loop header
LB: loop body
LE: loop exit
PB: predicated region body
PF: predicated region fallthrough
CT: control target
= control target key end

     0   :  { %7 = vsyncpa [#allocation3], 0  ;;  %s737_s0 = inlined_call_operand.hbm [shape: f32[4,16], index: 0, kind: input, shape index: {}]   ;;  %s738_s1 = inlined_call_operand.hbm [shape: f32[2,8,16], index: 1, kind: input, shape index: {}]   ;;  %s739_s2 = inlined_call_operand.hbm [shape: f32[2,4,8], index: 2, kind: output, shape index: {}]  }
   0x1   :  { %8 = vsyncpa [#allocation6], 0 }
   0x2   :  { %10 = vsyncpa [#allocation6 + $0x1], 0 }
   0x3   :  { %11 = vsyncpa [#allocation4], 0 }
   0x4   :  { %13 = vsyncpa [#allocation4 + $0x1], 0  ;;  %s587_s9 = smov 0   ;;  %s589_s10 = smov 0  }
   0x5   :  { %s591_s11 = smov 0   ;;  %s593_s12 = smov 0  }
   0x6   :  { %s595_s13 = smov 0   ;;  %s597_s14 = smov 0  }
   0x7 LB: > { %s333_s15 = sadd.s32 4294967295, %s569_s14   ;;  %s334_s16 = sadd.s32 4294967294, %s569_s14   ;;  %s569_s14 = sphi %s597_s14, %s19_s14   ;;  %s565_s13 = sphi %s595_s13, %s751_s13   ;;  %s561_s12 = sphi %s593_s12, %s750_s12   ;;  %s557_s11 = sphi %s591_s11, %s749_s11   ;;  %s553_s10 = sphi %s589_s10, %s748_s10   ;;  %s549_s9 = sphi %s587_s9, %s747_s9  }
   0x8   : > { %p74_p0 = scmp.ne.s32.totalorder %s553_s10, %s549_s9  ;;  %p621_p1 = scmp.eq.s32.totalorder %s333_s15, 0 }
   0x9   : > { %p625_p2 = scmp.eq.s32.totalorder %s333_s15, 1  ;;  %p106_p3 = scmp.eq.s32.totalorder %s334_s16, 1 }
   0xa   : > { %p631_p4 = por %p621_p1, %p74_p0  ;;  %p335_p5 = scmp.ge.s32.totalorder %s569_s14, 1 }
   0xb   : > { %p636_p6 = por %p106_p3, %p74_p0  ;;  %p113_p7 = scmp.lt.s32.totalorder %s569_s14, 3 }
   0xc   : > { %s125_s23 = sshll.u32 %s737_s0, 4  ;;  %p337_p9 = scmp.ge.s32.totalorder %s569_s14, 2  ;;  %s126_s23 = int_to_ptr.hbm [resolvable:$true] %s125_s23 }
   0xd   : > { %p644_p8 = pnand %p335_p5, %p113_p7  ;;  %s571_s25 = smov [#allocation2]  }
   0xe   : > { %s127_s26 = sshll.u32 %s571_s25, 4  ;;  %s31_s27 = sadd.s32 1, %s565_s13  ;;  %s128_s26 = int_to_ptr.vmem [resolvable:$true] %s127_s26 }
   0xf   : > { %p358_p10 = pneg %p644_p8  ;;  %p33_p12 = scmp.ge.s32.totalorder %s31_s27, 2 }
  0x10   : > { %s61_s28 = sadd.s32 1, %s557_s11  ;;  %p68_p13 = scmp.ne.s32.totalorder %s557_s11, %s553_s10 }
  0x11   : > { %p359_p11 = pnand %p358_p10, %p621_p1  ;;  %p69_p0 = scmp.eq.s32.totalorder %s569_s14, 0 }
  0x12   : > { %s753_s27 = smov (%p33_p12, %s31_s27), 0  ;;  %p666_p5 = por %p625_p2, %p68_p13 }
  0x13   : > { %361 = dma.hbm_to_vmem [thread:$0]  (!%p359_p11), %s126_s23, 64, %s128_s26, [#allocation3]  }
  0x14   : > { %p660_p3 = por %p69_p0, %p68_p13  ;;  %s56_s3 = ssub.s32 %s565_s13, %s753_s27 }
  0x15   : > { %p371_p7 = scmp.lt.s32.totalorder %s569_s14, 2  ;;  %p59_p10 = scmp.eq.s32.totalorder %s56_s3, 0 }
  0x16   : > { %s138_s4 = sand.u32 1, %s557_s11   ;;  %s339_s7 = sshll.u32 %s565_s13, 3 }
  0x17   : > { %s338_s5 = sshll.u32 %s138_s4, 3  ;;  %s147_s16 = scalar_lea.hbm %s738_s1, %s339_s7 }
  0x18   : > { %s675_s6 = scalar_select %p59_p10, %s557_s11, %s61_s28  }
  0x19   : > { %s142_s21 = scalar_lea.vmem [#allocation5], %s338_s5  ;;  %s149_s18 = sshll.u32 %s147_s16, 4  ;;  %s150_s18 = int_to_ptr.hbm [resolvable:$true] %s149_s18 }
  0x1a   : > { %s151_s22 = sshll.u32 %s142_s21, 4  ;;  %p363_p2 = pnand %p371_p7, %p660_p3  ;;  %s152_s22 = int_to_ptr.vmem [resolvable:$true] %s151_s22 }
  0x1b   : > { %s139_s23 = scalar_lea.sflag [#allocation6], %s138_s4  ;;  %160 = sbr.rel (%p644_p8) target bundleno = 170 (0xaa), region = 28 }
  0x1c   : > { %365 = dma.hbm_to_vmem [thread:$0]  (!%p363_p2), %s150_s18, 128, %s152_s22, %s139_s23  }
  0x20   : > { %536 = dma.done.wait (%p621_p1), [#allocation3], 64  }
  0x21   : > { %538 = vsyncadd (%p621_p1), [#allocation3], 4294967232  ;;  %s690_s25 = sand.u32 1, %s553_s10  }
  0x22   : > { %s342_s26 = sshll.u32 %s690_s25, 3  ;;  %s168_s28 = scalar_lea.sflag [#allocation6], %s690_s25 }
  0x23   : > { %s171_s29 = scalar_lea.vmem [#allocation5], %s342_s26 }
  0x24   : > { %540 = dma.done.wait (%p631_p4), %s168_s28, 128  }
  0x25   : > { %542 = vsyncadd (%p631_p4), %s168_s28, 4294967168  ;;  %vm195_vm0 = vcmask 130048   ;;  %v194_v0 = vld [vmem:[%s171_s29] sm:$0xff]  ;;  %v193_v1 = vld [vmem:[#allocation2] sm:$0xf]  ;;  %s343_s17 = sshll.u32 %s690_s25, 2 }
  0x26   : > { %344 = vmatpush.xpose.msk.msra.mxu0 %vm195_vm0, %v194_v0  ;;  %s347_s24 = sshll.u32 %s561_s12, 2  ;;  %s192_s7 = scalar_lea.vmem [#allocation7], %s343_s17  ;;  %vm222_vm1 = vcmask 60416  }
  0x27   : > { %s236_s5 = scalar_lea.hbm %s739_s2, %s347_s24  ;;  %s238_s8 = sshll.u32 %s192_s7, 4  ;;  %s239_s8 = int_to_ptr.vmem [resolvable:$true] %s238_s8 }
  0x28   : > { %s240_s15 = sshll.u32 %s236_s5, 4  ;;  %s225_s19 = scalar_lea.sflag [#allocation4], %s690_s25  ;;  %s241_s15 = int_to_ptr.hbm [resolvable:$true] %s240_s15 }
  0x29   : > { %345 = vmatmul.msk.f32.vlgmr.msra.gmra.mxu0 %vm195_vm0, %v193_v1  ;;  %s497_s16 = sshra.s32 %s241_s15, 4  ;;  %s503_s18 = scalar_lea.hbm %s739_s2, 8  ;;  %s498_s16 = int_to_ptr.hbm [resolvable:$true] %s497_s16 }
  0x2a   : > { %s499_s21 = scalar_lea.hbm %s498_s16, 4  ;;  %p504_p11 = scmp.lt.s32.totalorder %s498_s16, %s739_s2 }
  0x2b   : > { %p500_p1 = scmp.ne.s32.totalorder %s498_s16, %s499_s21  ;;  %p505_p12 = scmp.lt.s32.totalorder %s503_s18, %s499_s21 }
  0x2d   : > { %p501_p4 = pnand %p500_p1, %p666_p5  ;;  %p506_p13 = por %p505_p12, %p504_p11 }
  0x2f   : > { %p502_p8 = pneg %p501_p4 }
  0x31   : > { %p507_p0 = pnand %p506_p13, %p502_p8 }
  0xa6   : > { %v219_v2 = vpop.f32.mrf.mxu0 }
  0xa7   : > { %223 = vst.msk [vmem:[%s192_s7] sm:$0xf] %vm222_vm1, %v219_v2 }
  0xa8   : > { %510 = shalt.err (!%p507_p0)
}
  0xa9   : > { %356 = dma.vmem_to_hbm [thread:$0]  (%p666_p5), %s239_s8, 64, %s241_s15, %s225_s19  }
  0xaa PF: > { %s252_s25 = sand.u32 1, %s549_s9   ;;  %p367_p3 = pnand %p337_p9, %p636_p6 }
  0xab   : > { %s253_s28 = scalar_lea.sflag [#allocation4], %s252_s25 }
  0xac   : > { %p368_p7 = pneg %p367_p3 }
  0xae   : > { %544 = dma.done.wait (%p368_p7), %s253_s28, 64  }
  0xaf   : > { %546 = vsyncadd (%p368_p7), %s253_s28, 4294967232  ;;  %s19_s14 = sadd.s32 1, %s569_s14   ;;  %s747_s9 = smov %s553_s10 }
  0xb0   : > { %p16_p10 = scmp.ge.s32.totalorder %s19_s14, 4   ;;  %s748_s10 = smov %s557_s11 }
  0xb1   : > { %s749_s11 = smov %s675_s6  ;;  %s750_s12 = smov %s565_s13 }
  0xb2   : > { %s751_s13 = smov %s753_s27  ;;  %18 = sbr.rel (!%p16_p10) target bundleno = 7 (0x7), region = 78 }
  0xb7   :  { %259 = vsyncpa [#allocation3], 1 }
  0xb8   :  { %261 = vsyncpa [#allocation3 + $0x1], 1 }
  0xb9   :  { %262 = vsyncpa [#allocation6], 1 }
  0xba   :  { %264 = vsyncpa [#allocation6 + $0x1], 1 }
  0xbb   :  { %265 = vsyncpa [#allocation4], 1 }
  0xbc   :  { %267 = vsyncpa [#allocation4 + $0x1], 1 }

</bundles_post_ra>
